<compile_context>
chip_gen: v7x
topology: tpu7x:2x2x1
jax: 0.10.0
libtpu: 0.0.40
codegen_flags: <defaults>
</compile_context>

<pallas_src>
import functools

import jax
import jax.numpy as jnp
from jax import lax
from jax.experimental import pallas as pl
from jax.experimental.pallas import tpu as pltpu

BN_EPS = 1e-5


# ----------------------------------------------------------------------------
# Generation-aware sizing helpers
# ----------------------------------------------------------------------------
def _round_up(n, m):
    return ((n + m - 1) // m) * m


def _vmem_budget_bytes():
    """Per-kernel VMEM budget with compiler headroom (v5e/v6e: 128 MiB physical,
    v7x: 64 MiB per TensorCore)."""
    try:
        phys = int(getattr(pltpu.get_tpu_info(), "vmem_capacity_bytes", 64 << 20))
    except Exception:  # non-TPU trace / older jax: assume the smallest (v7x) VMEM
        phys = 64 << 20
    return (100 << 20) if phys >= (128 << 20) else (48 << 20)


def _divisor_tiles(dim, unit, target, min_tiles=1):
    """Tile-size candidates for `dim`: multiples of `unit` that divide `dim`,
    best-first (largest <= target that leaves >= min_tiles tiles)."""
    divs = [t for t in range(unit, dim + 1, unit) if dim % t == 0]
    if not divs:
        return [dim]                       # dim < unit: the full (unpadded) dim is legal
    good = [t for t in divs if t <= target and dim // t >= min_tiles]
    rest = [t for t in divs if t not in good]
    return sorted(good, reverse=True) + sorted(rest)


def _linear_vmem_bytes(tm, tn, c_in, x_it, w_it, out_it):
    """Working set of one (batch, feature) tile of the tiled linear kernels:
    double-buffered blocks + the f32 matmul result."""
    tm8 = _round_up(tm, 8)
    return (2 * tm8 * c_in * x_it          # x block (double-buffered by Pallas)
            + 2 * c_in * tn * w_it         # weight block
            + 2 * 2 * 8 * tn * 4           # per-feature vectors (sublane-padded)
            + 2 * tm8 * tn * out_it        # output block
            + tm8 * tn * 4)                # f32 matmul result


def _resident_bn_vmem_bytes(n, tn, c_in, x_it, w_it, out_it):
    """Working set of the single-pass BN kernel (full batch resident)."""
    n8 = _round_up(n, 8)
    return (2 * n8 * c_in * x_it           # x block (Pallas still double-buffers it)
            + 2 * c_in * tn * w_it         # weight block
            + 2 * 2 * 8 * tn * 4           # gamma / beta blocks
            + 2 * n8 * tn * out_it         # output block
            + 2 * n8 * tn * 4)             # f32 y and centered-y intermediates


def _fit_linear_tiles(n, c_in, c_out_p, x_it, w_it, out_it, budget):
    for tn in _divisor_tiles(c_out_p, 128, target=512, min_tiles=2):
        for tm in _divisor_tiles(n, 8, target=512):
            if _linear_vmem_bytes(tm, tn, c_in, x_it, w_it, out_it) <= budget:
                return tm, tn
    raise ValueError(
        "LayerWrapper kernel: no (batch, feature) tiling fits the VMEM budget "
        f"(N={n}, C_in={c_in}, C_out={c_out_p}, budget={budget} bytes); "
        "C_in (K) tiling is not implemented.")


# ----------------------------------------------------------------------------
# Kernels
# ----------------------------------------------------------------------------
def _linear_kernel(x_ref, wt_ref, b_ref, o_ref):
    """rescale=False: y = x @ W.T + b for one (batch-tile, feature-tile)."""
    y = jnp.dot(x_ref[...], wt_ref[...], preferred_element_type=jnp.float32)
    o_ref[...] = (y + b_ref[...]).astype(o_ref.dtype)


def _linear_bn_resident_kernel(x_ref, wt_ref, gamma_ref, beta_ref, o_ref):
    """rescale=True, single pass: BatchNorm1d(x @ W.T) for one feature tile.

    Linear bias cancels against the batch mean -> never loaded.  Centered
    variance (stable even when |mean| >> std).  BN math stays f32.
    """
    y = jnp.dot(x_ref[...], wt_ref[...], preferred_element_type=jnp.float32)
    inv_n = jnp.float32(1.0 / y.shape[0])
    mean = jnp.sum(y, axis=0, keepdims=True) * inv_n
    d = y - mean
    var = jnp.sum(d * d, axis=0, keepdims=True) * inv_n
    scale = lax.rsqrt(var + BN_EPS) * gamma_ref[...]
    o_ref[...] = (d * scale + beta_ref[...]).astype(o_ref.dtype)


def _make_linear_stats_kernel(n_rows, tm):
    """rescale=True two-pass, pass 1: write y, accumulate per-feature sums across
    the batch-tile (last, 'arbitrary') grid axis."""
    need_mask = (n_rows % tm) != 0

    def kernel(x_ref, wt_ref, y_ref, s1_ref, s2_ref):
        i = pl.program_id(1)                       # batch-tile index (reduction axis)
        y = jnp.dot(x_ref[...], wt_ref[...], preferred_element_type=jnp.float32)
        y_ref[...] = y.astype(y_ref.dtype)
        if need_mask:                              # zero contributions of padded rows
            row = i * tm + lax.broadcasted_iota(jnp.int32, y.shape, 0)
            y = jnp.where(row < n_rows, y, 0.0)
        s1 = jnp.sum(y, axis=0, keepdims=True)
        s2 = jnp.sum(y * y, axis=0, keepdims=True)

        @pl.when(i == 0)
        def _():
            s1_ref[...] = s1
            s2_ref[...] = s2

        @pl.when(i > 0)
        def _():
            s1_ref[...] += s1
            s2_ref[...] += s2

    return kernel


def _affine_kernel(y_ref, scale_ref, shift_ref, o_ref):
    """rescale=True two-pass, pass 2: yr = y * scale + shift for one tile."""
    o_ref[...] = (y_ref[...] * scale_ref[...] + shift_ref[...]).astype(o_ref.dtype)


# ----------------------------------------------------------------------------
# Wrapper
# ----------------------------------------------------------------------------
def prepare_linear_weight(w, dtype=None):
    """One-time prep of a PyTorch-layout (C_out, C_in) weight: transpose to
    (C_in, C_out) (plain NN matmul, no per-tile transpose) and optionally cast
    to the matmul dtype once, outside the per-call jit."""
    wt = jnp.asarray(w).T
    return wt if dtype is None else wt.astype(dtype)


@functools.partial(jax.jit,
                   static_argnames=("rescale", "out_dtype", "force_two_pass"))
def layer_wrapper_forward(x, w_t, b, gamma, beta, *, rescale=False,
                          out_dtype=None, force_two_pass=False):
    """Forward pass of LayerWrapper(nn.Linear(C_in, C_out), rescale=rescale).

    x: (N, C_in); w_t: (C_in, C_out) pre-transposed (see prepare_linear_weight);
    b / gamma / beta: (C_out,).
    """
    N, C_in = x.shape
    C_out = w_t.shape[1]
    out_dt = jnp.dtype(out_dtype) if out_dtype is not None else jnp.dtype(x.dtype)
    budget = _vmem_budget_bytes()

    # Pad C_out to a lane multiple so output stores stay unmasked / lane-dense.
    C_out_p = max(_round_up(C_out, 128), 128)
    if C_out_p != C_out:
        pad = C_out_p - C_out
        w_t = jnp.pad(w_t, ((0, 0), (0, pad)))
        b = jnp.pad(b, (0, pad))
        gamma = jnp.pad(gamma, (0, pad), constant_values=1.0)
        beta = jnp.pad(beta, (0, pad))

    b2 = b.reshape(1, C_out_p).astype(jnp.float32)
    gamma2 = gamma.reshape(1, C_out_p).astype(jnp.float32)
    beta2 = beta.reshape(1, C_out_p).astype(jnp.float32)

    x_it = jnp.dtype(x.dtype).itemsize
    w_it = jnp.dtype(w_t.dtype).itemsize
    o_it = out_dt.itemsize
    flops = 2 * N * C_in * C_out_p

    def _trim(o):
        return o[:, :C_out] if C_out_p != C_out else o

    # ------------------------------------------------------------------
    # rescale=False: y = x @ W.T + b, 2-D parallel grid
    # ------------------------------------------------------------------
    if not rescale:
        tm, tn = _fit_linear_tiles(N, C_in, C_out_p, x_it, w_it, o_it, budget)
        grid = (N // tm, C_out_p // tn)
        out = pl.pallas_call(
            _linear_kernel,
            out_shape=jax.ShapeDtypeStruct((N, C_out_p), out_dt),
            grid=grid,
            in_specs=[
                pl.BlockSpec((tm, C_in), lambda i, j: (i, 0)),
                pl.BlockSpec((C_in, tn), lambda i, j: (0, j)),
                pl.BlockSpec((1, tn), lambda i, j: (0, j)),
            ],
            out_specs=pl.BlockSpec((tm, tn), lambda i, j: (i, j)),
            compiler_params=pltpu.CompilerParams(
                dimension_semantics=("parallel", "parallel"),
                vmem_limit_bytes=budget),
            cost_estimate=pl.CostEstimate(
                flops=flops, transcendentals=0,
                bytes_accessed=N * C_in * x_it + C_in * C_out_p * w_it
                               + 4 * C_out_p + N * C_out_p * o_it),
        )(x, w_t, b2)
        return _trim(out)

    # ------------------------------------------------------------------
    # rescale=True, single pass (x resident) when it fits VMEM
    # ------------------------------------------------------------------
    tn_res = None
    if not force_two_pass:
        for cand in _divisor_tiles(C_out_p, 128, target=512, min_tiles=2):
            if _resident_bn_vmem_bytes(N, cand, C_in, x_it, w_it, o_it) <= budget:
                tn_res = cand
                break
    if tn_res is not None:
        out = pl.pallas_call(
            _linear_bn_resident_kernel,
            out_shape=jax.ShapeDtypeStruct((N, C_out_p), out_dt),
            grid=(C_out_p // tn_res,),
            in_specs=[
                pl.BlockSpec((N, C_in), lambda j: (0, 0)),
                pl.BlockSpec((C_in, tn_res), lambda j: (0, j)),
                pl.BlockSpec((1, tn_res), lambda j: (0, j)),
                pl.BlockSpec((1, tn_res), lambda j: (0, j)),
            ],
            out_specs=pl.BlockSpec((N, tn_res), lambda j: (0, j)),
            compiler_params=pltpu.CompilerParams(
                dimension_semantics=("parallel",),
                vmem_limit_bytes=budget),
            cost_estimate=pl.CostEstimate(
                flops=flops + 6 * N * C_out_p, transcendentals=C_out_p,
                bytes_accessed=N * C_in * x_it + C_in * C_out_p * w_it
                               + 8 * C_out_p + N * C_out_p * o_it),
        )(x, w_t, gamma2, beta2)
        return _trim(out)

    # ------------------------------------------------------------------
    # rescale=True, scalable two-pass fallback (batch-tiled)
    # ------------------------------------------------------------------
    tm, tn = _fit_linear_tiles(N, C_in, C_out_p, x_it, w_it, 4, budget)
    nb, nf = N // tm, C_out_p // tn

    y_int, s1, s2 = pl.pallas_call(
        _make_linear_stats_kernel(N, tm),
        out_shape=(
            jax.ShapeDtypeStruct((N, C_out_p), jnp.float32),
            jax.ShapeDtypeStruct((1, C_out_p), jnp.float32),
            jax.ShapeDtypeStruct((1, C_out_p), jnp.float32),
        ),
        grid=(nf, nb),                              # batch (stats reduction) axis last
        in_specs=[
            pl.BlockSpec((tm, C_in), lambda j, i: (i, 0)),
            pl.BlockSpec((C_in, tn), lambda j, i: (0, j)),
        ],
        out_specs=(
            pl.BlockSpec((tm, tn), lambda j, i: (i, j)),
            pl.BlockSpec((1, tn), lambda j, i: (0, j)),   # resident across batch axis
            pl.BlockSpec((1, tn), lambda j, i: (0, j)),
        ),
        compiler_params=pltpu.CompilerParams(
            dimension_semantics=("parallel", "arbitrary"),
            vmem_limit_bytes=budget),
        cost_estimate=pl.CostEstimate(
            flops=flops + 3 * N * C_out_p, transcendentals=0,
            bytes_accessed=N * C_in * x_it + C_in * C_out_p * w_it
                           + N * C_out_p * 4 + 8 * C_out_p),
    )(x, w_t)

    # Tiny per-feature math between the passes (plain JAX).
    # TODO(synk): streaming path uses E[y^2]-E[y]^2 (uncentered) variance.
    inv_n = jnp.float32(1.0 / N)
    mean = s1 * inv_n
    var = jnp.maximum(s2 * inv_n - mean * mean, 0.0)
    scale = gamma2 * lax.rsqrt(var + BN_EPS)
    shift = beta2 - mean * scale

    out = pl.pallas_call(
        _affine_kernel,
        out_shape=jax.ShapeDtypeStruct((N, C_out_p), out_dt),
        grid=(nb, nf),
        in_specs=[
            pl.BlockSpec((tm, tn), lambda i, j: (i, j)),
            pl.BlockSpec((1, tn), lambda i, j: (0, j)),
            pl.BlockSpec((1, tn), lambda i, j: (0, j)),
        ],
        out_specs=pl.BlockSpec((tm, tn), lambda i, j: (i, j)),
        compiler_params=pltpu.CompilerParams(
            dimension_semantics=("parallel", "parallel"),
            vmem_limit_bytes=budget),
        cost_estimate=pl.CostEstimate(
            flops=2 * N * C_out_p, transcendentals=0,
            bytes_accessed=N * C_out_p * (4 + o_it) + 8 * C_out_p),
    )(y_int, scale, shift)
    return _trim(out)


# ----------------------------------------------------------------------------
# Self-test
# ----------------------------------------------------------------------------
if __name__ == "__main__":
    # Small shapes consistent with the module: Linear(C_in=32 -> C_out=128), batch N=8.
    N, C_in, C_out = 8, 32, 128

    key = jax.random.PRNGKey(0)
    kx, kw, kb = jax.random.split(key, 3)

    x = jax.random.normal(kx, (N, C_in), dtype=jnp.float32)

    # PyTorch-like Linear init bound; default BatchNorm1d affine: gamma=1, beta=0.
    bound = 1.0 / (C_in ** 0.5)
    w = jax.random.uniform(kw, (C_out, C_in), jnp.float32, -bound, bound)
    b = jax.random.uniform(kb, (C_out,), jnp.float32, -bound, bound)
    gamma = jnp.ones((C_out,), jnp.float32)
    beta = jnp.zeros((C_out,), jnp.float32)

    # One-time weight layout/dtype prep (done outside the per-call jit).
    w_t = prepare_linear_weight(w)                       # (C_in, C_out) f32
    w_t_bf = prepare_linear_weight(w, jnp.bfloat16)      # (C_in, C_out) bf16

    # rescale=False path (raw linear output), batch/feature tiled grid.
    y = layer_wrapper_forward(x, w_t, b, gamma, beta, rescale=False)
    # rescale=True path, single-pass resident-batch BN.
    yr = layer_wrapper_forward(x, w_t, b, gamma, beta, rescale=True)
    # rescale=True path, forced scalable two-pass (batch-tiled stats) variant.
    yr_two_pass = layer_wrapper_forward(x, w_t, b, gamma, beta, rescale=True,
                                        force_two_pass=True)
    # bf16 MXU-input variant (weights/activations pre-cast outside the jit),
    # f32 BN math, f32 output.
    yr_bf16 = layer_wrapper_forward(x.astype(jnp.bfloat16), w_t_bf, b, gamma, beta,
                                    rescale=True, out_dtype=jnp.float32)

    jax.block_until_ready((y, yr, yr_two_pass, yr_bf16))

    # Plain-JAX reference (training-mode BatchNorm1d).
    y_ref = x @ w.T + b
    mean = y_ref.mean(axis=0, keepdims=True)
    var = ((y_ref - mean) ** 2).mean(axis=0, keepdims=True)
    yr_ref = (y_ref - mean) / jnp.sqrt(var + BN_EPS) * gamma + beta

    assert jnp.allclose(y, y_ref, atol=1e-4, rtol=1e-4)
    assert jnp.allclose(yr, yr_ref, atol=1e-4, rtol=1e-4)
    assert jnp.allclose(yr_two_pass, yr_ref, atol=1e-4, rtol=1e-4)
    assert jnp.allclose(yr_bf16, yr_ref, atol=1e-1, rtol=1e-1)

    print("KERNEL_OK")
</pallas_src>

<mosaic_0001>
module attributes {stable_mosaic.version = 11 : i64} {
  func.func @_linear_kernel(%arg0: i32, %arg1: i32, %arg2: memref<8x32xf32, #tpu.memory_space<vmem>>, %arg3: memref<32x128xf32, #tpu.memory_space<vmem>>, %arg4: memref<1x128xf32, #tpu.memory_space<vmem>>, %arg5: memref<8x128xf32, #tpu.memory_space<vmem>>) attributes {dimension_semantics = [#tpu.dimension_semantics<parallel>, #tpu.dimension_semantics<parallel>], iteration_bounds = array<i64: 1, 1>, scalar_prefetch = 0 : i64, scratch_operands = 0 : i64, tpu.core_type = #tpu.core_type<tc>, window_params = [{transform_indices = @transform_0, window_bounds = array<i64: 8, 32>}, {transform_indices = @transform_1, window_bounds = array<i64: 32, 128>}, {transform_indices = @transform_2, window_bounds = array<i64: 1, 128>}, {transform_indices = @transform_3, window_bounds = array<i64: 8, 128>}]} {
    %c0 = arith.constant 0 : index
    %c0_0 = arith.constant 0 : index
    %0 = vector.load %arg2[%c0, %c0_0] : memref<8x32xf32, #tpu.memory_space<vmem>>, vector<8x32xf32>
    %c0_1 = arith.constant 0 : index
    %c0_2 = arith.constant 0 : index
    %1 = vector.load %arg3[%c0_1, %c0_2] : memref<32x128xf32, #tpu.memory_space<vmem>>, vector<32x128xf32>
    %cst = arith.constant dense<0.000000e+00> : vector<8x128xf32>
    %2 = tpu.matmul %0, %1, %cst {dimension_numbers = #tpu.dot_dimension_numbers<[1], [0], [0], [1], [0, 0, 1, 1], [], []>} : vector<8x32xf32>, vector<32x128xf32>, vector<8x128xf32> -> vector<8x128xf32>
    %c0_3 = arith.constant 0 : index
    %c0_4 = arith.constant 0 : index
    %3 = vector.load %arg4[%c0_3, %c0_4] : memref<1x128xf32, #tpu.memory_space<vmem>>, vector<1x128xf32>
    %4 = vector.broadcast %3 : vector<1x128xf32> to vector<8x128xf32>
    %5 = arith.addf %2, %4 : vector<8x128xf32>
    %c0_5 = arith.constant 0 : index
    %c0_6 = arith.constant 0 : index
    %6 = vector.load %arg5[%c0_5, %c0_6] : memref<8x128xf32, #tpu.memory_space<vmem>>, vector<8x128xf32>
    tpu.vector_store %arg5[%c0_5, %c0_6], %5 {strides = array<i32>} : memref<8x128xf32, #tpu.memory_space<vmem>>, vector<8x128xf32>,
    return
  }
  func.func @transform_0(%arg0: i32, %arg1: i32) -> (i32, i32) {
    %c0_i32 = arith.constant 0 : i32
    %c0_i32_0 = arith.constant 0 : i32
    return %arg0, %c0_i32 : i32, i32
  }
  func.func @transform_1(%arg0: i32, %arg1: i32) -> (i32, i32) {
    %c0_i32 = arith.constant 0 : i32
    %c0_i32_0 = arith.constant 0 : i32
    return %c0_i32, %arg1 : i32, i32
  }
  func.func @transform_2(%arg0: i32, %arg1: i32) -> (i32, i32) {
    %c0_i32 = arith.constant 0 : i32
    %c0_i32_0 = arith.constant 0 : i32
    return %c0_i32, %arg1 : i32, i32
  }
  func.func @transform_3(%arg0: i32, %arg1: i32) -> (i32, i32) {
    %c0_i32 = arith.constant 0 : i32
    return %arg0, %arg1 : i32, i32
  }
}

</mosaic_0001>

<bundles_post_ra>
// kernel: layer_wrapper_forward.1
= control target key start
LH: loop header
LB: loop body
LE: loop exit
PB: predicated region body
PF: predicated region fallthrough
CT: control target
= control target key end

     0   :  { %8 = vsyncpa [#allocation3], 0  ;;  %s322_s0 = inlined_call_operand.hbm [shape: f32[8,32], index: 0, kind: input, shape index: {}]   ;;  %s323_s1 = inlined_call_operand.hbm [shape: f32[32,128], index: 1, kind: input, shape index: {}]   ;;  %s324_s2 = inlined_call_operand.vmem [shape: f32[1,128], index: 2, kind: input, shape index: {}]   ;;  %s325_s3 = inlined_call_operand.hbm [shape: f32[8,128], index: 3, kind: output, shape index: {}]  }
   0x1   :  { %9 = vsyncpa [#allocation6], 0 }
   0x2   :  { %10 = vsyncpa [#allocation4], 0  ;;  %s248_s12 = smov [#allocation2]   ;;  %s249_s14 = smov [#allocation5]  }
   0x3   :  { %s17_s13 = sshll.u32 %s248_s12, 4  ;;  %s26_s15 = sshll.u32 %s249_s14, 4  ;;  %s18_s13 = int_to_ptr.vmem [resolvable:$true] %s17_s13  ;;  %s276_s15 = int_to_ptr.vmem [resolvable:$true] %s26_s15 }
   0x4   :  { %s176_s18 = scalar_lea.hbm %s322_s0, 128 }
   0x5   :  { %p177_p0 = scmp.ne.s32.totalorder %s322_s0, %s176_s18  ;;  %p180_p1 = scmp.lt.u32.totalorder %s176_s18, %s322_s0 }
   0x7   :  { %p182_p2 = pnand %p180_p1, %p177_p0 }
   0x9   :  { %185 = shalt.err (!%p182_p2)
}
   0xa   :  { %s186_s23 = scalar_lea.vmem %s18_s13, 128  ;;  %p191_p4 = scmp.lt.s32.totalorder %s18_s13, %s18_s13 }
   0xb   :  { %p187_p3 = scmp.ne.s32.totalorder %s18_s13, %s186_s23  ;;  %p192_p5 = scmp.lt.s32.totalorder %s186_s23, %s186_s23 }
   0xd   :  { %p193_p6 = por %p192_p5, %p191_p4 }
   0xf   :  { %p194_p7 = pnand %p193_p6, %p187_p3 }
  0x11   :  { %197 = shalt.err (!%p194_p7)
}
  0x12   :  { %20 = dma.hbm_to_vmem [thread:$0]  %s322_s0, 128, %s18_s13, [#allocation3]  }
  0x13   :  { %s198_s28 = scalar_lea.hbm %s323_s1, 512 }
  0x14   :  { %p199_p8 = scmp.ne.s32.totalorder %s323_s1, %s198_s28  ;;  %p202_p9 = scmp.lt.u32.totalorder %s198_s28, %s323_s1 }
  0x16   :  { %p204_p10 = pnand %p202_p9, %p199_p8 }
  0x18   :  { %207 = shalt.err (!%p204_p10)
}
  0x19   :  { %s208_s6 = scalar_lea.vmem %s276_s15, 512  ;;  %p213_p12 = scmp.lt.s32.totalorder %s276_s15, %s276_s15 }
  0x1a   :  { %p209_p11 = scmp.ne.s32.totalorder %s276_s15, %s208_s6  ;;  %p214_p13 = scmp.lt.s32.totalorder %s208_s6, %s208_s6 }
  0x1c   :  { %p215_p0 = por %p214_p13, %p213_p12 }
  0x1e   :  { %p216_p1 = pnand %p215_p0, %p209_p11 }
  0x20   :  { %219 = shalt.err (!%p216_p1)
}
  0x21   :  { %s250_s0 = smov 128   ;;  %s251_s7 = smov 8  }
  0x22   :  { %32 = dma.hbm_to_vmem [thread:$0]  %s323_s1, 512, %s276_s15, [#allocation6], %s250_s0, %s250_s0, %s251_s7  }
  0x23   :  { %242 = dma.done.wait [#allocation3], 128  }
  0x24   :  { %243 = vsyncadd [#allocation3], 4294967168 }
  0x25   :  { %244 = dma.done.wait [#allocation6], 512  }
  0x26   :  { %245 = vsyncadd [#allocation6], 4294966784  ;;  %v252_v0 = vmov 0.0|0.0   ;;  %vm253_vm0 = vmmov 0   ;;  %v254_v1 = vmov 0.0   ;;  %v42_v2 = vld [vmem:[#allocation5] sm:$0xff] }
  0x27   :  { %162 = vmatprep.subr.bf16.mxu0 %v252_v0  ;;  %159 = vmatprep.mubr.msk.f32.mxu0 %vm253_vm0, %v254_v1  ;;  %v43_v3 = vld [vmem:[#allocation5 + $0x8] sm:$0xff]  ;;  %v44_v4 = vld [vmem:[#allocation5 + $0x10] sm:$0xff]  ;;  %v45_v6 = vld [vmem:[#allocation5 + $0x18] sm:$0xff]  ;;  %vm53_vm1 = vcmask 261120   ;;  %s255_s11 = smov [#allocation7]  }
  0x28   :  { %v163_v5 = vpack.c.bf16 %v43_v3, %v42_v2  ;;  %v166_v7 = vpack.c.bf16 %v45_v6, %v44_v4  ;;  %v41_v8 = vld [vmem:[#allocation2] sm:$0xff]  ;;  %s134_s12 = sshll.u32 %s255_s11, 4  ;;  %s135_s12 = int_to_ptr.vmem [resolvable:$true] %s134_s12 }
  0x29   :  { %v144_v9 = vld [vmem:[%s324_s2] ss:$0 sm:$0xff]  ;;  %s220_s13 = scalar_lea.vmem %s135_s12, 128  ;;  %p225_p3 = scmp.lt.s32.totalorder %s135_s12, %s135_s12 }
  0x2a   :  { %164 = vmatpush3.bf16.msra.mxu0 %v163_v5  ;;  %p221_p2 = scmp.ne.s32.totalorder %s135_s12, %s220_s13  ;;  %p226_p4 = scmp.lt.s32.totalorder %s220_s13, %s220_s13 }
  0x2b   :  { %165 = vmatprep.subr.bf16.mxu0 %v252_v0 }
  0x2c   :  { %p227_p5 = por %p226_p4, %p225_p3 }
  0x2e   :  { %167 = vmatpush3.bf16.msra.mxu0 %v166_v7  ;;  %p228_p6 = pnand %p227_p5, %p221_p2 }
  0x31   :  { %160 = vmatmul.mubr.msk.f32.vlgmr.msra.gmra.mrb[0].mxu0 %vm53_vm1, %v41_v8 }
 0x104   :  { %v123_v10 = vpop.f32.mrb[0].mxu0 }
 0x105   :  { %v124_v11 = vadd.f32 %v144_v9, %v123_v10  ;;  %v161_v12 = vpop.f32.mrb[1].mxu0 }
 0x107   :  { %127 = vst [vmem:[#allocation7] sm:$0xff] %v124_v11 }
 0x108   :  { %231 = shalt.err (!%p228_p6)
}
 0x109   :  { %s232_s16 = scalar_lea.hbm %s325_s3, 128 }
 0x10a   :  { %p233_p7 = scmp.ne.s32.totalorder %s325_s3, %s232_s16  ;;  %p236_p8 = scmp.lt.u32.totalorder %s232_s16, %s325_s3 }
 0x10c   :  { %p238_p9 = pnand %p236_p8, %p233_p7 }
 0x10e   :  { %241 = shalt.err (!%p238_p9)
}
 0x10f   :  { %137 = dma.vmem_to_hbm [thread:$0]  %s135_s12, 128, %s325_s3, [#allocation4]  }
 0x110   :  { %246 = dma.done.wait [#allocation4], 128  }
 0x111   :  { %247 = vsyncadd [#allocation4], 4294967168 }
 0x112   :  { %141 = vsyncpa [#allocation3], 1 }
 0x113   :  { %142 = vsyncpa [#allocation6], 1 }
 0x114   :  { %143 = vsyncpa [#allocation4], 1 }

</bundles_post_ra>
